<compile_context>
chip_gen: v7x
topology: tpu7x:2x2x1
jax: 0.10.0
libtpu: 0.0.40
codegen_flags: <defaults>
</compile_context>

<pallas_src>
import functools

import numpy as np
import jax
import jax.numpy as jnp
from jax.experimental import pallas as pl
from jax.experimental.pallas import tpu as pltpu


def _round_up(v, m):
    return ((v + m - 1) // m) * m


# --------------------------------------------------------------------------
# Pallas kernel 1: fused normalize + matmul + masked single-exp partial sums.
#   inputs : X (B_pad, D) f32, P^T (D, C_pad) bf16, labels (B_pad, 1) i32
#   outputs: p_sim_sum (1, C_pad) f32, n_sim_sum (1, C_pad) f32
#   grid   : (C_pad // tn [parallel], B_pad // tm [arbitrary, reduction last])
# --------------------------------------------------------------------------
def _fused_kernel(x_ref, pt_ref, lab_ref, psum_ref, nsum_ref,
                  *, tm, tn, alpha, mrg, b_real):
    j = pl.program_id(0)          # class tile   (parallel)
    i = pl.program_id(1)          # batch tile   (reduction, innermost)

    @pl.when(i == 0)
    def _init():
        psum_ref[...] = jnp.zeros_like(psum_ref)
        nsum_ref[...] = jnp.zeros_like(nsum_ref)

    # Row-wise L2 normalization of this batch tile (rsqrt -> EUP, eps-safe).
    x = x_ref[...].astype(jnp.float32)
    xn = x * jax.lax.rsqrt(jnp.sum(x * x, axis=1, keepdims=True) + 1e-12)

    # bf16 operands into the MXU, f32 accumulation.  Contraction is
    # LHS-last x RHS-first (P^T pre-transposed) so output lanes = classes.
    cos = jax.lax.dot_general(
        xn.astype(jnp.bfloat16), pt_ref[...],
        dimension_numbers=(((1,), (0,)), ((), ())),
        preferred_element_type=jnp.float32)                          # (tm, tn)

    # Build pos/neg masks in-kernel from labels (no dense one-hot DMA).
    # Padded batch rows (label == -1, row >= b_real) contribute to neither sum.
    lab = lab_ref[...]                                               # (tm, 1)
    col = j * tn + jax.lax.broadcasted_iota(jnp.int32, (tm, tn), 1)  # (tm, tn)
    row = i * tm + jax.lax.broadcasted_iota(jnp.int32, (tm, 1), 0)   # (tm, 1)
    valid = row < b_real                                             # (tm, 1)
    is_pos = lab == col                                              # single cmp
    pos_m = jnp.logical_and(is_pos, valid)
    neg_m = jnp.logical_and(jnp.logical_not(is_pos), valid)

    # Single exp per element (the two masks are complementary); keep f32.
    z = jnp.where(pos_m, -alpha * (cos - mrg), alpha * (cos + mrg))
    e = jnp.exp(z)
    psum_ref[...] += jnp.sum(jnp.where(pos_m, e, 0.0), axis=0, keepdims=True)
    nsum_ref[...] += jnp.sum(jnp.where(neg_m, e, 0.0), axis=0, keepdims=True)


def fused_cos_exp_sums(x, pt_norm, labels, *, alpha, mrg, b_real, tm, tn):
    b_pad, d = x.shape
    c_pad = pt_norm.shape[1]
    nj, ni = c_pad // tn, b_pad // tm

    kernel = functools.partial(
        _fused_kernel, tm=tm, tn=tn,
        alpha=float(alpha), mrg=float(mrg), b_real=int(b_real))

    cost = pl.CostEstimate(
        flops=2 * b_pad * c_pad * d + 8 * b_pad * c_pad,
        transcendentals=b_pad * c_pad + b_pad * nj,
        bytes_accessed=(4 * b_pad * d * nj          # X re-read per class tile
                        + 2 * d * c_pad             # P^T (bf16) once
                        + 4 * b_pad * nj            # labels
                        + 2 * 4 * c_pad))           # the two sum vectors

    grid_spec = pltpu.PrefetchScalarGridSpec(
        num_scalar_prefetch=0,
        grid=(nj, ni),
        in_specs=[
            pl.BlockSpec((tm, d), lambda j, i: (i, 0)),    # X tile
            pl.BlockSpec((d, tn), lambda j, i: (0, j)),    # P^T tile (resident
                                                           #  across inner loop)
            pl.BlockSpec((tm, 1), lambda j, i: (i, 0)),    # labels tile
        ],
        out_specs=(
            pl.BlockSpec((1, tn), lambda j, i: (0, j)),    # p_sim_sum (acc)
            pl.BlockSpec((1, tn), lambda j, i: (0, j)),    # n_sim_sum (acc)
        ),
    )

    return pl.pallas_call(
        kernel,
        grid_spec=grid_spec,
        out_shape=(jax.ShapeDtypeStruct((1, c_pad), jnp.float32),
                   jax.ShapeDtypeStruct((1, c_pad), jnp.float32)),
        compiler_params=pltpu.CompilerParams(
            dimension_semantics=("parallel", "arbitrary")),
        cost_estimate=cost,
    )(x, pt_norm, labels)


# --------------------------------------------------------------------------
# Pallas kernel 2: tiny log / scale epilogue (includes num_valid count).
#   scalars (SMEM f32[4]): [0] ref_pos [1] ref_neg [2] 1/nb_classes
#                          [3] 1e-6 * mean(eigvals)
# --------------------------------------------------------------------------
def _epilogue_kernel(scal_ref, psum_ref, nsum_ref, loss_ref, *, nb_classes):
    ref_pos = scal_ref[0]
    ref_neg = scal_ref[1]
    inv_nc = scal_ref[2]
    eig_term = scal_ref[3]

    p = psum_ref[...]
    n = nsum_ref[...]
    # Mask out lane-padded (fake) classes.
    cvalid = jax.lax.broadcasted_iota(jnp.int32, p.shape, 1) < nb_classes
    # Classes with at least one positive have p_sim_sum > 0 (exp > 0).
    num_valid = jnp.maximum(
        jnp.sum(jnp.where(jnp.logical_and(cvalid, p > 0.0), 1.0, 0.0)), 1.0)
    pos = jnp.sum(jnp.where(cvalid, jnp.log(1.0 + p * ref_pos), 0.0),
                  axis=1, keepdims=True)
    neg = jnp.sum(jnp.where(cvalid, jnp.log(1.0 + n * ref_neg), 0.0),
                  axis=1, keepdims=True)
    loss_ref[...] = pos / num_valid + neg * inv_nc - eig_term


def loss_epilogue_pallas(scalars, p_sim_sum, n_sim_sum, nb_classes):
    kernel = functools.partial(_epilogue_kernel, nb_classes=int(nb_classes))
    return pl.pallas_call(
        kernel,
        out_shape=jax.ShapeDtypeStruct((1, 1), jnp.float32),
        in_specs=[
            pl.BlockSpec(memory_space=pltpu.MemorySpace.SMEM),
            pl.BlockSpec(memory_space=pltpu.MemorySpace.VMEM),
            pl.BlockSpec(memory_space=pltpu.MemorySpace.VMEM),
        ],
        out_specs=pl.BlockSpec(memory_space=pltpu.MemorySpace.VMEM),
    )(scalars, p_sim_sum, n_sim_sum)


# --------------------------------------------------------------------------
# Host-side glue (mirrors the CPU / sklearn parts of the original module).
# --------------------------------------------------------------------------
def pca_project(x_np, n_components):
    # TODO(synk): sklearn Isomap (geodesic MDS embedding) has no Pallas/JAX
    # equivalent; deterministic truncated-PCA projection used as stand-in.
    xc = x_np - x_np.mean(axis=0, keepdims=True)
    _, _, vt = np.linalg.svd(xc, full_matrices=False)
    return xc @ vt[:n_components].T


def general_logmap_np(xp):
    # xp: (B, dim), rows L2-normalized.  Matches General_Logmap loop semantics
    # with a guard against theta == 0 / pi (sin(theta) == 0 -> NaN in the ref).
    dim = xp.shape[1]
    last = np.clip(xp[:, dim - 1], -1.0, 1.0)
    theta = np.arccos(last)                                  # (B,)
    mean = xp.mean(axis=1)                                   # (B,)
    s = np.sin(theta)
    safe_s = np.where(np.abs(s) < 1e-7, 1.0, s)
    scale = np.where(np.abs(s) < 1e-7, 1.0, theta / safe_s)  # (B,)
    return (xp[:, : dim - 1] - mean[:, None]) * scale[:, None]


def lda_top_eig(batch, labels, dim):
    # Matches Linear_discriminant_analysis(method='naive') semantics.
    uniq = np.unique(labels)
    mean_vectors = np.stack([batch[labels == c].mean(axis=0) for c in uniq])
    s_w = np.zeros((dim, dim))
    for ci, c in enumerate(uniq):
        mv = mean_vectors[ci].reshape(dim, 1)
        for row in batch[labels == c]:
            d = row.reshape(dim, 1) - mv
            s_w += d @ d.T
    overall = batch.mean(axis=0).reshape(dim, 1)
    s_b = np.zeros((dim, dim))
    for mv in mean_vectors:
        d = mv.reshape(dim, 1) - overall
        s_b += 4.0 * (d @ d.T)
    fisher = np.linalg.inv(s_w + 0.001 * np.eye(dim)) @ s_b
    # TODO(synk): torch.eig (general eigendecomposition) has no Pallas lowering;
    # the k x k (k <= 5) problem is solved on host with numpy.
    w, v = np.linalg.eig(fisher)
    order = np.argsort(-w.real)
    top_vec = np.real(v[:, order[0]]).reshape(dim, 1)
    return float(np.mean(w.real)), top_vec


# --------------------------------------------------------------------------
# Module
# --------------------------------------------------------------------------
class PPGMLTripletLossPallas:
    def __init__(self, nb_classes, sz_embed, mrg=0.1, alpha=32):
        self.nb_classes = int(nb_classes)
        self.sz_embed = int(sz_embed)
        self.mrg = float(mrg)
        self.alpha = float(alpha)
        self.offset = 0.5

        self.keys = range(3)
        values = [i + 3 for i in range(1, len(self.keys) + 1)]   # {0:4, 1:5, 2:6}
        self.LDS_dim = dict(zip(self.keys, values))

        # Deterministic orthogonal init of proxies (rows orthonormal),
        # mirroring nn.init.orthogonal_ on a (nb_classes, sz_embed) parameter.
        g = np.asarray(
            jax.random.normal(jax.random.PRNGKey(0),
                              (sz_embed, nb_classes), jnp.float32),
            dtype=np.float64)
        q, _ = np.linalg.qr(g)                        # orthonormal columns
        proxies = jnp.asarray(q.T, jnp.float32)       # (nb_classes, sz_embed)
        self.proxies = proxies

        # Proxies are parameters: normalize / transpose / cast bf16 / lane-pad
        # ONCE here instead of every kernel-1 grid step.
        self._tn = min(256, _round_up(self.nb_classes, 128))
        self._c_pad = _round_up(self.nb_classes, self._tn)
        pn = proxies * jax.lax.rsqrt(
            jnp.sum(proxies * proxies, axis=1, keepdims=True) + 1e-12)
        pt = jnp.transpose(pn).astype(jnp.bfloat16)            # (D, C)
        self.pt_norm = jnp.pad(
            pt, ((0, 0), (0, self._c_pad - self.nb_classes)))  # (D, C_pad)

    def forward(self, X, T):
        B, D = X.shape
        C = self.nb_classes

        # ---------------- hot path: fused Pallas kernel 1 -------------------
        tm = min(256, _round_up(B, 8))
        b_pad = _round_up(B, tm)
        x_pad = jnp.pad(X.astype(jnp.float32), ((0, b_pad - B), (0, 0)))
        labels = jnp.pad(jnp.asarray(T, jnp.int32), (0, b_pad - B),
                         constant_values=-1).reshape(b_pad, 1)
        p_sim_sum, n_sim_sum = fused_cos_exp_sums(
            x_pad, self.pt_norm, labels,
            alpha=self.alpha, mrg=self.mrg, b_real=B, tm=tm, tn=self._tn)

        # ---------------- host glue (as in the original CPU path) -----------
        X_np = np.asarray(X, dtype=np.float64)
        X_proj = {i: pca_project(X_np, self.LDS_dim[i]) for i in self.keys}
        pip_loss = {}
        for i in self.keys:
            col = X_np[:, D - self.LDS_dim[i]]
            v = X_proj[i].T @ col
            pip_loss[i] = 0.001 * (D - X_proj[i].shape[1]) + 2.0 * float(np.sum(v * v))
        min_ind = min(pip_loss, key=pip_loss.get)

        Xp = X_proj[min_ind]
        Xp = Xp / np.maximum(np.linalg.norm(Xp, axis=1, keepdims=True), 1e-12)

        log_map = general_logmap_np(Xp)
        k = self.LDS_dim[min_ind] - 1
        eigval_mean, eigvec = lda_top_eig(log_map, np.asarray(T), k)
        mean_log = abs(eigval_mean) * 0.1

        # ref_pos / ref_neg derivation stays on device: no mid-forward host
        # sync on kernel-1 outputs.  center follows the reference module:
        # abs(mean(embeddings)) + offset.
        center = jnp.abs(jnp.mean(X)) + self.offset
        unif_ref = jax.random.uniform(
            jax.random.PRNGKey(1), (B, k),
            minval=center - mean_log, maxval=center + mean_log,
            dtype=jnp.float32)
        ref = jnp.mean(jnp.abs(unif_ref @ jnp.asarray(eigvec, jnp.float32)))
        ref_pos = jnp.clip(jnp.sqrt(ref), 0.7, 1.5)
        ref_neg = ref_pos

        scalars = jnp.stack([
            ref_pos.astype(jnp.float32),
            ref_neg.astype(jnp.float32),
            jnp.float32(1.0 / C),
            jnp.float32(1e-6 * eigval_mean)])

        # ---------------- Pallas kernel 2: tiny epilogue ---------------------
        loss = loss_epilogue_pallas(scalars, p_sim_sum, n_sim_sum, C)
        return loss[0, 0]


if __name__ == "__main__":
    key = jax.random.PRNGKey(0)
    kx, kt = jax.random.split(key)
    B, D, C = 8, 32, 16
    X = jax.random.normal(kx, (B, D), dtype=jnp.float32)
    T = jax.random.randint(kt, (B,), 0, C)

    model = PPGMLTripletLossPallas(nb_classes=C, sz_embed=D)
    loss = model.forward(X, T)
    jax.block_until_ready(loss)
    assert np.isfinite(float(loss))
    print("KERNEL_OK")
</pallas_src>

<mosaic_0001>
module attributes {stable_mosaic.version = 11 : i64} {
  func.func @_fused_kernel(%arg0: i32, %arg1: i32, %arg2: memref<8x32xf32, #tpu.memory_space<vmem>>, %arg3: memref<32x128xbf16, #tpu.memory_space<vmem>>, %arg4: memref<8x1xi32, #tpu.memory_space<vmem>>, %arg5: memref<1x128xf32, #tpu.memory_space<vmem>>, %arg6: memref<1x128xf32, #tpu.memory_space<vmem>>) attributes {dimension_semantics = [#tpu.dimension_semantics<parallel>, #tpu.dimension_semantics<arbitrary>], iteration_bounds = array<i64: 1, 1>, scalar_prefetch = 0 : i64, scratch_operands = 0 : i64, tpu.core_type = #tpu.core_type<tc>, window_params = [{transform_indices = @transform_0, window_bounds = array<i64: 8, 32>}, {transform_indices = @transform_1, window_bounds = array<i64: 32, 128>}, {transform_indices = @transform_2, window_bounds = array<i64: 8, 1>}, {transform_indices = @transform_3, window_bounds = array<i64: 1, 128>}, {transform_indices = @transform_4, window_bounds = array<i64: 1, 128>}]} {
    %c0_i32 = arith.constant 0 : i32
    %0 = arith.cmpi eq, %arg1, %c0_i32 : i32
    %1 = arith.extui %0 : i1 to i32
    %c0_i32_0 = arith.constant 0 : i32
    %2 = arith.cmpi ne, %1, %c0_i32_0 : i32
    scf.if %2 {
      %cst_26 = arith.constant 0.000000e+00 : f32
      %57 = vector.broadcast %cst_26 : f32 to vector<1x128xf32>
      %c0_27 = arith.constant 0 : index
      %c0_28 = arith.constant 0 : index
      %58 = vector.load %arg5[%c0_27, %c0_28] : memref<1x128xf32, #tpu.memory_space<vmem>>, vector<1x128xf32>
      tpu.vector_store %arg5[%c0_27, %c0_28], %57 {strides = array<i32>} : memref<1x128xf32, #tpu.memory_space<vmem>>, vector<1x128xf32>,
      %cst_29 = arith.constant 0.000000e+00 : f32
      %59 = vector.broadcast %cst_29 : f32 to vector<1x128xf32>
      %c0_30 = arith.constant 0 : index
      %c0_31 = arith.constant 0 : index
      %60 = vector.load %arg6[%c0_30, %c0_31] : memref<1x128xf32, #tpu.memory_space<vmem>>, vector<1x128xf32>
      tpu.vector_store %arg6[%c0_30, %c0_31], %59 {strides = array<i32>} : memref<1x128xf32, #tpu.memory_space<vmem>>, vector<1x128xf32>,
    } else {
    }
    %c0 = arith.constant 0 : index
    %c0_1 = arith.constant 0 : index
    %3 = vector.load %arg2[%c0, %c0_1] : memref<8x32xf32, #tpu.memory_space<vmem>>, vector<8x32xf32>
    %4 = arith.mulf %3, %3 : vector<8x32xf32>
    %cst = arith.constant dense<0.000000e+00> : vector<8xf32>
    %5 = vector.multi_reduction <add>, %4, %cst [1] : vector<8x32xf32> to vector<8xf32>
    %6 = vector.shape_cast %5 : vector<8xf32> to vector<8x1xf32>
    %cst_2 = arith.constant 9.99999996E-13 : f32
    %7 = vector.broadcast %cst_2 : f32 to vector<8x1xf32>
    %8 = arith.addf %6, %7 : vector<8x1xf32>
    %9 = math.rsqrt %8 : vector<8x1xf32>
    %10 = vector.broadcast %9 : vector<8x1xf32> to vector<8x32xf32>
    %11 = arith.mulf %3, %10 : vector<8x32xf32>
    %12 = arith.truncf %11 : vector<8x32xf32> to vector<8x32xbf16>
    %c0_3 = arith.constant 0 : index
    %c0_4 = arith.constant 0 : index
    %13 = vector.load %arg3[%c0_3, %c0_4] : memref<32x128xbf16, #tpu.memory_space<vmem>>, vector<32x128xbf16>
    %cst_5 = arith.constant dense<0.000000e+00> : vector<8x128xf32>
    %14 = tpu.matmul %12, %13, %cst_5 {dimension_numbers = #tpu.dot_dimension_numbers<[1], [0], [0], [1], [0, 0, 1, 1], [], []>} : vector<8x32xbf16>, vector<32x128xbf16>, vector<8x128xf32> -> vector<8x128xf32>
    %c0_6 = arith.constant 0 : index
    %c0_7 = arith.constant 0 : index
    %15 = vector.load %arg4[%c0_6, %c0_7] : memref<8x1xi32, #tpu.memory_space<vmem>>, vector<8x1xi32>
    %c128_i32 = arith.constant 128 : i32
    %16 = arith.muli %arg0, %c128_i32 : i32
    %17 = tpu.iota {dimensions = array<i32: 1>} : vector<8x128xi32>
    %18 = vector.broadcast %16 : i32 to vector<8x128xi32>
    %19 = arith.addi %18, %17 : vector<8x128xi32>
    %c8_i32 = arith.constant 8 : i32
    %20 = arith.muli %arg1, %c8_i32 : i32
    %21 = tpu.iota {dimensions = array<i32: 0>} : vector<8x1xi32>
    %22 = vector.broadcast %20 : i32 to vector<8x1xi32>
    %23 = arith.addi %22, %21 : vector<8x1xi32>
    %c8_i32_8 = arith.constant 8 : i32
    %24 = vector.broadcast %c8_i32_8 : i32 to vector<8x1xi32>
    %25 = arith.cmpi slt, %23, %24 : vector<8x1xi32>
    %26 = vector.broadcast %15 : vector<8x1xi32> to vector<8x128xi32>
    %27 = arith.cmpi eq, %26, %19 : vector<8x128xi32>
    %28 = vector.broadcast %25 : vector<8x1xi1> to vector<8x128xi1>
    %29 = arith.andi %27, %28 : vector<8x128xi1>
    %cst_9 = arith.constant dense<true> : vector<8x128xi1>
    %30 = arith.xori %27, %cst_9 : vector<8x128xi1>
    %31 = vector.broadcast %25 : vector<8x1xi1> to vector<8x128xi1>
    %32 = arith.andi %30, %31 : vector<8x128xi1>
    %cst_10 = arith.constant 1.000000e-01 : f32
    %33 = vector.broadcast %cst_10 : f32 to vector<8x128xf32>
    %34 = arith.subf %14, %33 : vector<8x128xf32>
    %cst_11 = arith.constant -3.200000e+01 : f32
    %35 = vector.broadcast %cst_11 : f32 to vector<8x128xf32>
    %36 = arith.mulf %35, %34 : vector<8x128xf32>
    %cst_12 = arith.constant 1.000000e-01 : f32
    %37 = vector.broadcast %cst_12 : f32 to vector<8x128xf32>
    %38 = arith.addf %14, %37 : vector<8x128xf32>
    %cst_13 = arith.constant 3.200000e+01 : f32
    %39 = vector.broadcast %cst_13 : f32 to vector<8x128xf32>
    %40 = arith.mulf %39, %38 : vector<8x128xf32>
    %41 = arith.select %29, %36, %40 : vector<8x128xi1>, vector<8x128xf32>
    %42 = math.exp %41 : vector<8x128xf32>
    %c0_14 = arith.constant 0 : index
    %c0_15 = arith.constant 0 : index
    %43 = vector.load %arg5[%c0_14, %c0_15] : memref<1x128xf32, #tpu.memory_space<vmem>>, vector<1x128xf32>
    %cst_16 = arith.constant 0.000000e+00 : f32
    %44 = vector.broadcast %cst_16 : f32 to vector<8x128xf32>
    %45 = arith.select %29, %42, %44 : vector<8x128xi1>, vector<8x128xf32>
    %cst_17 = arith.constant dense<0.000000e+00> : vector<128xf32>
    %46 = vector.multi_reduction <add>, %45, %cst_17 [0] : vector<8x128xf32> to vector<128xf32>
    %47 = vector.shape_cast %46 : vector<128xf32> to vector<1x128xf32>
    %48 = arith.addf %43, %47 : vector<1x128xf32>
    %c0_18 = arith.constant 0 : index
    %c0_19 = arith.constant 0 : index
    %49 = vector.load %arg5[%c0_18, %c0_19] : memref<1x128xf32, #tpu.memory_space<vmem>>, vector<1x128xf32>
    tpu.vector_store %arg5[%c0_18, %c0_19], %48 {strides = array<i32>} : memref<1x128xf32, #tpu.memory_space<vmem>>, vector<1x128xf32>,
    %c0_20 = arith.constant 0 : index
    %c0_21 = arith.constant 0 : index
    %50 = vector.load %arg6[%c0_20, %c0_21] : memref<1x128xf32, #tpu.memory_space<vmem>>, vector<1x128xf32>
    %cst_22 = arith.constant 0.000000e+00 : f32
    %51 = vector.broadcast %cst_22 : f32 to vector<8x128xf32>
    %52 = arith.select %32, %42, %51 : vector<8x128xi1>, vector<8x128xf32>
    %cst_23 = arith.constant dense<0.000000e+00> : vector<128xf32>
    %53 = vector.multi_reduction <add>, %52, %cst_23 [0] : vector<8x128xf32> to vector<128xf32>
    %54 = vector.shape_cast %53 : vector<128xf32> to vector<1x128xf32>
    %55 = arith.addf %50, %54 : vector<1x128xf32>
    %c0_24 = arith.constant 0 : index
    %c0_25 = arith.constant 0 : index
    %56 = vector.load %arg6[%c0_24, %c0_25] : memref<1x128xf32, #tpu.memory_space<vmem>>, vector<1x128xf32>
    tpu.vector_store %arg6[%c0_24, %c0_25], %55 {strides = array<i32>} : memref<1x128xf32, #tpu.memory_space<vmem>>, vector<1x128xf32>,
    return
  }
  func.func @transform_0(%arg0: i32, %arg1: i32) -> (i32, i32) {
    %c0_i32 = arith.constant 0 : i32
    %c0_i32_0 = arith.constant 0 : i32
    return %arg1, %c0_i32 : i32, i32
  }
  func.func @transform_1(%arg0: i32, %arg1: i32) -> (i32, i32) {
    %c0_i32 = arith.constant 0 : i32
    %c0_i32_0 = arith.constant 0 : i32
    return %c0_i32, %arg0 : i32, i32
  }
  func.func @transform_2(%arg0: i32, %arg1: i32) -> (i32, i32) {
    %c0_i32 = arith.constant 0 : i32
    %c0_i32_0 = arith.constant 0 : i32
    return %arg1, %c0_i32 : i32, i32
  }
  func.func @transform_3(%arg0: i32, %arg1: i32) -> (i32, i32) {
    %c0_i32 = arith.constant 0 : i32
    %c0_i32_0 = arith.constant 0 : i32
    return %c0_i32, %arg0 : i32, i32
  }
  func.func @transform_4(%arg0: i32, %arg1: i32) -> (i32, i32) {
    %c0_i32 = arith.constant 0 : i32
    %c0_i32_0 = arith.constant 0 : i32
    return %c0_i32, %arg0 : i32, i32
  }
}

</mosaic_0001>

<bundles_post_ra>
// kernel: tpu_custom_call.1
= control target key start
LH: loop header
LB: loop body
LE: loop exit
PB: predicated region body
PF: predicated region fallthrough
CT: control target
= control target key end

     0   :  { %10 = vsyncpa [#allocation3], 0  ;;  %s374_s0 = inlined_call_operand.vmem [shape: f32[8,32], index: 0, kind: input, shape index: {}]   ;;  %s375_s1 = inlined_call_operand.hbm [shape: bf16[32,128], index: 1, kind: input, shape index: {}]   ;;  %s376_s2 = inlined_call_operand.vmem [shape: s32[8,1], index: 2, kind: input, shape index: {}]   ;;  %s377_s3 = inlined_call_operand.hbm [shape: f32[1,128], index: 3, kind: output, shape index: {0}]   ;;  %s378_s4 = inlined_call_operand.hbm [shape: f32[1,128], index: 4, kind: output, shape index: {1}]  }
   0x1   :  { %11 = vsyncpa [#allocation4], 0 }
   0x2   :  { %12 = vsyncpa [#allocation7], 0  ;;  %s288_s15 = smov [#allocation2]   ;;  %s216_s19 = scalar_lea.hbm %s375_s1, 256 }
   0x3   :  { %s20_s16 = sshll.u32 %s288_s15, 4  ;;  %p217_p0 = scmp.ne.s32.totalorder %s375_s1, %s216_s19  ;;  %s21_s16 = int_to_ptr.vmem [resolvable:$true] %s20_s16 }
   0x4   :  { %p220_p1 = scmp.lt.u32.totalorder %s216_s19, %s375_s1 }
   0x6   :  { %p222_p2 = pnand %p220_p1, %p217_p0 }
   0x8   :  { %225 = shalt.err (!%p222_p2)
}
   0x9   :  { %s226_s24 = scalar_lea.vmem %s21_s16, 256  ;;  %p231_p4 = scmp.lt.s32.totalorder %s21_s16, %s21_s16 }
   0xa   :  { %p227_p3 = scmp.ne.s32.totalorder %s21_s16, %s226_s24  ;;  %p232_p5 = scmp.lt.s32.totalorder %s226_s24, %s226_s24 }
   0xc   :  { %p233_p6 = por %p232_p5, %p231_p4 }
   0xe   :  { %p234_p7 = pnand %p233_p6, %p227_p3 }
  0x10   :  { %237 = shalt.err (!%p234_p7)
}
  0x11   :  { %s289_s25 = smov 64   ;;  %s290_s26 = smov 4  }
  0x12   :  { %26 = dma.hbm_to_vmem [thread:$0]  %s375_s1, 256, %s21_s16, [#allocation3], %s289_s25, %s289_s25, %s290_s26  }
  0x13   :  { %282 = dma.done.wait [#allocation3], 256  }
  0x14   :  { %283 = vsyncadd [#allocation3], 4294967040  ;;  %v39_v0 = vld [vmem:[%s374_s0] sm:$0xff]  ;;  %vm41_vm0 = vcmask 261120   ;;  %v291_v4 = vmov 0.0   ;;  %vm292_vm1 = vmmov 0   ;;  %v110_v13 = vlaneseq }
  0x15   :  { %v40_v1 = vmul.f32 %v39_v0, %v39_v0  ;;  %v210_v3 = vld [vmem:[#allocation2] sm:$0xff]   ;;  %192 = vmatprep.subr.bf16.mxu0 %v291_v4  ;;  %37 = vst [vmem:[#allocation5] sm:$0x1] %v291_v4  ;;  %38 = vst [vmem:[#allocation6] sm:$0x1] %v291_v4  ;;  %196 = vmatprep.mubr.msk.bf16.mxu0 %vm292_vm1, %v291_v4  ;;  %v211_v5 = vld [vmem:[#allocation2 + $0x8] sm:$0xff]  }
  0x16   :  { %193 = vmatpush3.bf16.msra.mxu0 %v210_v3  ;;  %v108_v6 = vld [vmem:[%s376_s2] sm:$0xff]  ;;  %v293_v7 = vmov 0   ;;  %v111_v14 = vand.u32 127, %v110_v13  ;;  %vm294_vm3 = vmmov 1   ;;  %s295_s0 = smov [#allocation5]   ;;  %s296_s6 = smov [#allocation6]  }
  0x17   :  { %v42_v2 = vsel %vm41_vm0, %v40_v1, 0.0  ;;  %194 = vmatprep.subr.bf16.mxu0 %v291_v4  ;;  %209 = vset.pattern.permute.xlu0 %v293_v7  ;;  %s162_s2 = sshll.u32 %s295_s0, 4  ;;  %s172_s7 = sshll.u32 %s296_s6, 4  ;;  %s163_s2 = int_to_ptr.vmem [resolvable:$true] %s162_s2  ;;  %s342_s7 = int_to_ptr.vmem [resolvable:$true] %s172_s7 }
  0x18   :  { %43 = vadd.xlane.f32.xlu0 %v42_v2  ;;  %s238_s8 = scalar_lea.vmem %s163_s2, 16  ;;  %s242_s9 = scalar_lea.vmem %s163_s2, 32 }
  0x19   :  { %p239_p8 = scmp.ne.s32.totalorder %s163_s2, %s238_s8  ;;  %p243_p9 = scmp.lt.s32.totalorder %s163_s2, %s163_s2 }
  0x1a   :  { %195 = vmatpush3.bf16.msra.mxu0 %v211_v5  ;;  %p244_p10 = scmp.lt.s32.totalorder %s242_s9, %s238_s8 }
  0x1c   :  { %v136_v39 = vld [vmem:[#allocation5] sm:$0x1]  ;;  %v146_v40 = vld [vmem:[#allocation6] sm:$0x1]  ;;  %p245_p11 = por %p244_p10, %p243_p9 }
  0x1e   :  { %p246_p12 = pnand %p245_p11, %p239_p8 }
  0x2e   :  { %121 = vperm.xlu0 %209, %v108_v6  }
  0xa5   :  { %v44_v8 = vpop.xlane.xlu0 %43 }
  0xa6   :  { %v45_v9 = vadd.f32 1e-12, %v44_v8 }
  0xa8   :  { %212 = vrsqrt.f32 %v45_v9 }
  0xad   :  { %v122_v15 = vpop.permute.xlu0 %121 }
  0xae   :  { %vm123_vm2 = vcmp.eq.s32.totalorder %v122_v15, %v111_v14 }
  0xaf   :  { %vm127_vm4 = vmxor %vm123_vm2, %vm294_vm3 }
  0xb2   :  { %v213_v10 = vpop.eup %212 }
  0xb3   :  { %v47_v11 = vmul.f32 %v213_v10, %v39_v0 }
  0xb5   :  { %v48_v12 = vpack.c.bf16 %v47_v11, %v47_v11 }
  0xb7   :  { %197 = vmatmul.mubr.msk.bf16.vlgmr.msra.gmra.mrb[0].mxu0 %vm41_vm0, %v48_v12 }
 0x18a   :  { %v102_v16 = vpop.f32.mrb[0].mxu0 }
 0x18b   :  { %v188_v17 = vadd.f32 -0.1, %v102_v16  ;;  %v131_v18 = vadd.f32 0.1, %v102_v16  ;;  %v198_v19 = vpop.f32.mrb[1].mxu0 }
 0x18c   :  { %v105_v20 = vpop.f32.mrb[2].mxu0 }
 0x18d   :  { %v130_v21 = vmul.f32 -32.0, %v188_v17  ;;  %v132_v22 = vmul.f32 32.0, %v131_v18  ;;  %v199_v23 = vpop.f32.mrb[3].mxu0 }
 0x18f   :  { %v133_v24 = vsel %vm123_vm2, %v130_v21, %v132_v22 }
 0x190   :  { %v134_v25 = vmul.f32 1.442695, %v133_v24 }
 0x192   :  { %214 = vpow2.f32 %v134_v25 }
 0x19c   :  { %v215_v26 = vpop.eup %214 }
 0x19d   :  { %v137_v27 = vsel %vm123_vm2, %v215_v26, 0.0  ;;  %v147_v28 = vsel %vm127_vm4, %v215_v26, 0.0 }
 0x19e   :  { %v138_v29 = vrot.slane %v137_v27, 4  ;;  %v148_v30 = vrot.slane %v147_v28, 4 }
 0x1a0   :  { %v139_v31 = vadd.f32 %v138_v29, %v137_v27  ;;  %v149_v32 = vadd.f32 %v148_v30, %v147_v28 }
 0x1a2   :  { %v140_v33 = vrot.slane %v139_v31, 2  ;;  %v150_v34 = vrot.slane %v149_v32, 2 }
 0x1a4   :  { %v141_v35 = vadd.f32 %v140_v33, %v139_v31  ;;  %v151_v36 = vadd.f32 %v150_v34, %v149_v32 }
 0x1a6   :  { %v142_v37 = vrot.slane %v141_v35, 1  ;;  %v152_v38 = vrot.slane %v151_v36, 1 }
 0x1a8   :  { %v143_v41 = vadd.f32 %v142_v37, %v141_v35  ;;  %v153_v42 = vadd.f32 %v152_v38, %v151_v36 }
 0x1aa   :  { %v144_v43 = vadd.f32 %v143_v41, %v136_v39  ;;  %v154_v44 = vadd.f32 %v153_v42, %v146_v40 }
 0x1ac   :  { %145 = vst [vmem:[#allocation5] sm:$0x1] %v144_v43  ;;  %155 = vst [vmem:[#allocation6] sm:$0x1] %v154_v44 }
 0x1ad   :  { %249 = shalt.err (!%p246_p12)
}
 0x1ae   :  { %s250_s12 = scalar_lea.hbm %s377_s3, 16 }
 0x1af   :  { %p251_p13 = scmp.ne.s32.totalorder %s377_s3, %s250_s12  ;;  %p254_p0 = scmp.lt.u32.totalorder %s250_s12, %s377_s3 }
 0x1b1   :  { %p256_p1 = pnand %p254_p0, %p251_p13 }
 0x1b3   :  { %259 = shalt.err (!%p256_p1)
}
 0x1b4   :  { %165 = dma.vmem_to_hbm [thread:$0]  %s163_s2, 16, %s377_s3, [#allocation4]  }
 0x1b5   :  { %s260_s19 = scalar_lea.vmem %s342_s7, 16  ;;  %s264_s20 = scalar_lea.vmem %s342_s7, 32 }
 0x1b6   :  { %p261_p2 = scmp.ne.s32.totalorder %s342_s7, %s260_s19  ;;  %p265_p3 = scmp.lt.s32.totalorder %s342_s7, %s342_s7 }
 0x1b7   :  { %p266_p4 = scmp.lt.s32.totalorder %s264_s20, %s260_s19 }
 0x1b9   :  { %p267_p5 = por %p266_p4, %p265_p3 }
 0x1bb   :  { %p268_p6 = pnand %p267_p5, %p261_p2 }
 0x1bd   :  { %271 = shalt.err (!%p268_p6)
}
 0x1be   :  { %s272_s23 = scalar_lea.hbm %s378_s4, 16 }
 0x1bf   :  { %p273_p7 = scmp.ne.s32.totalorder %s378_s4, %s272_s23  ;;  %p276_p8 = scmp.lt.u32.totalorder %s272_s23, %s378_s4 }
 0x1c1   :  { %p278_p9 = pnand %p276_p8, %p273_p7 }
 0x1c3   :  { %281 = shalt.err (!%p278_p9)
}
 0x1c4   :  { %175 = dma.vmem_to_hbm [thread:$0]  %s342_s7, 16, %s378_s4, [#allocation7]  }
 0x1c5   :  { %284 = dma.done.wait [#allocation4], 16  }
 0x1c6   :  { %285 = vsyncadd [#allocation4], 4294967280 }
 0x1c7   :  { %286 = dma.done.wait [#allocation7], 16  }
 0x1c8   :  { %287 = vsyncadd [#allocation7], 4294967280 }
 0x1c9   :  { %182 = vsyncpa [#allocation3], 1 }
 0x1ca   :  { %183 = vsyncpa [#allocation4], 1 }
 0x1cb   :  { %184 = vsyncpa [#allocation7], 1 }

</bundles_post_ra>
